<compile_context>
chip_gen: v7x
topology: tpu7x:2x2x1
jax: 0.10.0
libtpu: 0.0.40
codegen_flags: <defaults>
</compile_context>

<pallas_src>
import functools

import jax
import jax.numpy as jnp
from jax.experimental import pallas as pl
from jax.experimental.pallas import tpu as pltpu


D_MODEL = 32
TRUNK_CHANNEL_LIST = [16, 32, 64]          # trunk.channel_list (high-res -> low-res)
NECK_BACKBONE_CHANNEL_LIST = [16, 32, 64]  # neck.backbone_channel_list


# ---------------------------------------------------------------------------
# Pallas kernel: one trunk level fused with its neck lateral 1x1 conv.
#   x_ref  : (T, K)  bf16  im2col patches (K = 2*2*Cin)
#   tw_ref : (K, Ct) bf16  trunk conv weight      tb_ref : (1, Ct) f32 bias
#   nw_ref : (Ct, D) bf16  neck 1x1 weight        nb_ref : (1, D)  f32 bias
#   t_ref  : (T, Ct) bf16  trunk feature (channels-last, feeds the next level)
#   n_ref  : (D, T)  f32   neck feature, written channels-first so the NCHW
#                          output needs no post-kernel transpose and the store
#                          is lane-dense at real resolutions.
# ---------------------------------------------------------------------------
def _fused_level_kernel(x_ref, tw_ref, tb_ref, nw_ref, nb_ref, t_ref, n_ref):
    t = jnp.dot(x_ref[...], tw_ref[...], preferred_element_type=jnp.float32)
    t = t + tb_ref[...]
    t16 = t.astype(jnp.bfloat16)
    t_ref[...] = t16
    n = jnp.dot(t16, nw_ref[...], preferred_element_type=jnp.float32)
    n = n + nb_ref[...]
    n_ref[...] = jnp.transpose(n)          # (D, T) channels-first


def _spatial_tile(S, cap=2048):
    """Largest spatial tile that divides S, is <= cap, and is lane-friendly."""
    if S <= cap:
        return S
    t = (cap // 128) * 128
    while t >= 128:
        if S % t == 0:
            return t
        t -= 128
    return S   # fallback: single block


def _im2col_2x2(x_nhwc):
    """Non-overlapping 2x2 patch extraction.  (B,H,W,C) -> (B, Ho*Wo, 4*C).

    # TODO(synk): fold this regrouping into the Pallas kernel (strip-shaped
    # BlockSpec + in-kernel sublane shuffle) to remove one extra HBM pass
    # per level; kept as an XLA transpose here for lowering robustness.
    """
    B, H, W, C = x_nhwc.shape
    Ho, Wo = H // 2, W // 2
    p = x_nhwc.reshape(B, Ho, 2, Wo, 2, C)
    p = jnp.transpose(p, (0, 1, 3, 2, 4, 5))          # (B, Ho, Wo, 2, 2, C)
    return p.reshape(B, Ho * Wo, 4 * C), Ho, Wo


def fused_trunk_neck_level(x_nhwc, tw, tb, nw, nb):
    """One trunk stride-2 conv + neck 1x1 conv as a single tiled pallas_call."""
    patches, Ho, Wo = _im2col_2x2(x_nhwc)
    B, S, K = patches.shape
    Ct = tw.shape[1]
    D = nw.shape[1]
    T = _spatial_tile(S)
    assert S % T == 0, (S, T)
    grid = (B, S // T)

    flops = 2 * B * S * (K * Ct + Ct * D)
    bytes_accessed = (B * S * K * 2 + B * S * Ct * 2 + B * D * S * 4
                      + (tw.size + nw.size) * 2 + (tb.size + nb.size) * 4)

    trunk_out, neck_out = pl.pallas_call(
        _fused_level_kernel,
        out_shape=(
            jax.ShapeDtypeStruct((B, S, Ct), jnp.bfloat16),   # trunk feature
            jax.ShapeDtypeStruct((B, D, S), jnp.float32),     # neck feature, NC(HW)
        ),
        grid=grid,
        in_specs=[
            pl.BlockSpec((None, T, K), lambda b, j: (b, j, 0)),
            pl.BlockSpec((K, Ct), lambda b, j: (0, 0)),
            pl.BlockSpec((1, Ct), lambda b, j: (0, 0)),
            pl.BlockSpec((Ct, D), lambda b, j: (0, 0)),
            pl.BlockSpec((1, D), lambda b, j: (0, 0)),
        ],
        out_specs=(
            pl.BlockSpec((None, T, Ct), lambda b, j: (b, j, 0)),
            pl.BlockSpec((None, D, T), lambda b, j: (b, 0, j)),
        ),
        compiler_params=pltpu.CompilerParams(
            dimension_semantics=("parallel", "parallel"),
            vmem_limit_bytes=32 * 1024 * 1024,
        ),
        cost_estimate=pl.CostEstimate(
            flops=flops, transcendentals=0, bytes_accessed=bytes_accessed),
    )(
        patches.astype(jnp.bfloat16),
        tw.astype(jnp.bfloat16),
        tb.reshape(1, Ct).astype(jnp.float32),
        nw.astype(jnp.bfloat16),
        nb.reshape(1, D).astype(jnp.float32),
    )

    trunk_nhwc = trunk_out.reshape(B, Ho, Wo, Ct)   # channels-last for next level
    neck_nchw = neck_out.reshape(B, D, Ho, Wo)      # already NCHW, free reshape
    return trunk_nhwc, neck_nchw


# ---------------------------------------------------------------------------
# Sine positional encoding (PositionEmbeddingSine, normalize=True).
# Parameter-free: computed once per resolution OUTSIDE the jit and reused.
# ---------------------------------------------------------------------------
def sine_pos_enc(H, W, D, temperature=10000.0):
    num_pos_feats = D // 2
    eps = 1e-6
    scale = 2.0 * jnp.pi
    y_embed = jnp.cumsum(jnp.ones((H, W), jnp.float32), axis=0)
    x_embed = jnp.cumsum(jnp.ones((H, W), jnp.float32), axis=1)
    y_embed = y_embed / (y_embed[-1:, :] + eps) * scale
    x_embed = x_embed / (x_embed[:, -1:] + eps) * scale
    dim_t = jnp.arange(num_pos_feats, dtype=jnp.float32)
    dim_t = temperature ** (2.0 * jnp.floor(dim_t / 2.0) / num_pos_feats)
    pos_x = x_embed[:, :, None] / dim_t
    pos_y = y_embed[:, :, None] / dim_t
    pos_x = jnp.stack(
        [jnp.sin(pos_x[:, :, 0::2]), jnp.cos(pos_x[:, :, 1::2])], axis=3
    ).reshape(H, W, num_pos_feats)
    pos_y = jnp.stack(
        [jnp.sin(pos_y[:, :, 0::2]), jnp.cos(pos_y[:, :, 1::2])], axis=3
    ).reshape(H, W, num_pos_feats)
    pos = jnp.concatenate([pos_y, pos_x], axis=2)     # (H, W, D)
    return jnp.transpose(pos, (2, 0, 1))[None]        # (1, D, H, W)


# ---------------------------------------------------------------------------
# Parameter construction (deterministic, synthetic)
# ---------------------------------------------------------------------------
def init_params(key, cin=4):
    def lin(k, k_in, k_out):
        kw, kb = jax.random.split(k)
        w = jax.random.normal(kw, (k_in, k_out), jnp.float32) * (k_in ** -0.5)
        b = jax.random.normal(kb, (k_out,), jnp.float32) * 0.01
        return w, b

    keys = jax.random.split(key, 2 * len(TRUNK_CHANNEL_LIST))
    p = {}
    c_prev = cin
    for i, c in enumerate(TRUNK_CHANNEL_LIST):
        p[f"trunk_w{i}"], p[f"trunk_b{i}"] = lin(keys[2 * i], 2 * 2 * c_prev, c)
        p[f"neck_w{i}"], p[f"neck_b{i}"] = lin(keys[2 * i + 1], c, D_MODEL)
        c_prev = c
    return p


# ---------------------------------------------------------------------------
# ImageEncoder forward
# ---------------------------------------------------------------------------
@functools.partial(jax.jit, static_argnames=("scalp",))
def image_encoder_forward(sample_nchw, params, pos_cached, scalp=1):
    # ImageEncoder.__init__ assert: trunk vs neck channel lists must agree.
    assert TRUNK_CHANNEL_LIST == NECK_BACKBONE_CHANNEL_LIST, (
        f"trunk {TRUNK_CHANNEL_LIST} and neck {NECK_BACKBONE_CHANNEL_LIST} "
        "channel dims do not match.")

    B = sample_nchw.shape[0]
    x = jnp.transpose(sample_nchw, (0, 2, 3, 1))      # NCHW -> NHWC (tiny, one-time)

    # --- trunk + neck lateral conv, fused per level ---
    # TODO(synk): a full FpnNeck also does top-down interpolation+add fusion for
    # selected levels; only the lateral-conv + pos-enc path is implemented here.
    features = []
    for i in range(len(TRUNK_CHANNEL_LIST)):
        x, neck_nchw = fused_trunk_neck_level(
            x,
            params[f"trunk_w{i}"], params[f"trunk_b{i}"],
            params[f"neck_w{i}"], params[f"neck_b{i}"])
        features.append(neck_nchw)                    # (B, D, H_i, W_i)

    pos = [jnp.broadcast_to(p, (B,) + p.shape[1:]) for p in pos_cached]

    # --- ImageEncoder.forward semantics ---
    if scalp > 0:
        features, pos = features[:-scalp], pos[:-scalp]
    src = features[-1]
    return {"vision_features": src, "vision_pos_enc": pos, "backbone_fpn": features}


# ---------------------------------------------------------------------------
if __name__ == "__main__":
    key = jax.random.PRNGKey(0)
    k_img, k_par = jax.random.split(key)

    B, C, H, W = 2, 4, 16, 16
    sample = jax.random.normal(k_img, (B, C, H, W), jnp.float32)   # NCHW, like PyTorch
    params = init_params(k_par, cin=C)

    # Positional encodings: parameter-free, computed once per resolution.
    pos_cached = tuple(
        sine_pos_enc(H // (2 ** (i + 1)), W // (2 ** (i + 1)), D_MODEL)
        for i in range(len(TRUNK_CHANNEL_LIST)))

    out = image_encoder_forward(sample, params, pos_cached, scalp=1)
    jax.block_until_ready(out["vision_features"])
    for t in out["backbone_fpn"]:
        jax.block_until_ready(t)
    for t in out["vision_pos_enc"]:
        jax.block_until_ready(t)

    # sanity: with scalp=1 and 3 levels, vision_features is the H/4 level
    assert out["vision_features"].shape == (B, D_MODEL, H // 4, W // 4)
    assert len(out["backbone_fpn"]) == 2 and len(out["vision_pos_enc"]) == 2
    print("KERNEL_OK")
</pallas_src>

<mosaic_0001>
module attributes {stable_mosaic.version = 11 : i64} {
  func.func @_fused_level_kernel(%arg0: i32, %arg1: i32, %arg2: memref<1x64x16xbf16, #tpu.memory_space<vmem>>, %arg3: memref<16x16xbf16, #tpu.memory_space<vmem>>, %arg4: memref<1x16xf32, #tpu.memory_space<vmem>>, %arg5: memref<16x32xbf16, #tpu.memory_space<vmem>>, %arg6: memref<1x32xf32, #tpu.memory_space<vmem>>, %arg7: memref<1x64x16xbf16, #tpu.memory_space<vmem>>, %arg8: memref<1x32x64xf32, #tpu.memory_space<vmem>>) attributes {dimension_semantics = [#tpu.dimension_semantics<parallel>, #tpu.dimension_semantics<parallel>], iteration_bounds = array<i64: 2, 1>, scalar_prefetch = 0 : i64, scratch_operands = 0 : i64, tpu.core_type = #tpu.core_type<tc>, window_params = [{transform_indices = @transform_0, window_bounds = array<i64: 1, 64, 16>}, {pipeline_mode = #tpu.pipeline_mode<synchronous>, transform_indices = @transform_1, window_bounds = array<i64: 16, 16>}, {pipeline_mode = #tpu.pipeline_mode<synchronous>, transform_indices = @transform_2, window_bounds = array<i64: 1, 16>}, {pipeline_mode = #tpu.pipeline_mode<synchronous>, transform_indices = @transform_3, window_bounds = array<i64: 16, 32>}, {pipeline_mode = #tpu.pipeline_mode<synchronous>, transform_indices = @transform_4, window_bounds = array<i64: 1, 32>}, {transform_indices = @transform_5, window_bounds = array<i64: 1, 64, 16>}, {transform_indices = @transform_6, window_bounds = array<i64: 1, 32, 64>}]} {
    %c0 = arith.constant 0 : index
    %c0_0 = arith.constant 0 : index
    %c0_1 = arith.constant 0 : index
    %0 = vector.load %arg2[%c0, %c0_0, %c0_1] : memref<1x64x16xbf16, #tpu.memory_space<vmem>>, vector<1x64x16xbf16>
    %1 = vector.shape_cast %0 : vector<1x64x16xbf16> to vector<64x16xbf16>
    %c0_2 = arith.constant 0 : index
    %c0_3 = arith.constant 0 : index
    %2 = vector.load %arg3[%c0_2, %c0_3] : memref<16x16xbf16, #tpu.memory_space<vmem>>, vector<16x16xbf16>
    %cst = arith.constant dense<0.000000e+00> : vector<64x16xf32>
    %3 = tpu.matmul %1, %2, %cst {dimension_numbers = #tpu.dot_dimension_numbers<[1], [0], [0], [1], [0, 0, 1, 1], [], []>} : vector<64x16xbf16>, vector<16x16xbf16>, vector<64x16xf32> -> vector<64x16xf32>
    %c0_4 = arith.constant 0 : index
    %c0_5 = arith.constant 0 : index
    %4 = vector.load %arg4[%c0_4, %c0_5] : memref<1x16xf32, #tpu.memory_space<vmem>>, vector<1x16xf32>
    %5 = vector.broadcast %4 : vector<1x16xf32> to vector<64x16xf32>
    %6 = arith.addf %3, %5 : vector<64x16xf32>
    %7 = arith.truncf %6 : vector<64x16xf32> to vector<64x16xbf16>
    %c0_6 = arith.constant 0 : index
    %c0_7 = arith.constant 0 : index
    %c0_8 = arith.constant 0 : index
    %8 = vector.load %arg7[%c0_6, %c0_7, %c0_8] : memref<1x64x16xbf16, #tpu.memory_space<vmem>>, vector<1x64x16xbf16>
    %9 = vector.shape_cast %8 : vector<1x64x16xbf16> to vector<64x16xbf16>
    %10 = vector.shape_cast %7 : vector<64x16xbf16> to vector<1x64x16xbf16>
    tpu.vector_store %arg7[%c0_6, %c0_7, %c0_8], %10 {strides = array<i32>} : memref<1x64x16xbf16, #tpu.memory_space<vmem>>, vector<1x64x16xbf16>,
    %c0_9 = arith.constant 0 : index
    %c0_10 = arith.constant 0 : index
    %11 = vector.load %arg5[%c0_9, %c0_10] : memref<16x32xbf16, #tpu.memory_space<vmem>>, vector<16x32xbf16>
    %cst_11 = arith.constant dense<0.000000e+00> : vector<64x32xf32>
    %12 = tpu.matmul %7, %11, %cst_11 {dimension_numbers = #tpu.dot_dimension_numbers<[1], [0], [0], [1], [0, 0, 1, 1], [], []>} : vector<64x16xbf16>, vector<16x32xbf16>, vector<64x32xf32> -> vector<64x32xf32>
    %c0_12 = arith.constant 0 : index
    %c0_13 = arith.constant 0 : index
    %13 = vector.load %arg6[%c0_12, %c0_13] : memref<1x32xf32, #tpu.memory_space<vmem>>, vector<1x32xf32>
    %14 = vector.broadcast %13 : vector<1x32xf32> to vector<64x32xf32>
    %15 = arith.addf %12, %14 : vector<64x32xf32>
    %16 = tpu.transpose %15, [1, 0] : vector<64x32xf32> -> vector<32x64xf32>
    %c0_14 = arith.constant 0 : index
    %c0_15 = arith.constant 0 : index
    %c0_16 = arith.constant 0 : index
    %17 = vector.load %arg8[%c0_14, %c0_15, %c0_16] : memref<1x32x64xf32, #tpu.memory_space<vmem>>, vector<1x32x64xf32>
    %18 = vector.shape_cast %17 : vector<1x32x64xf32> to vector<32x64xf32>
    %19 = vector.shape_cast %16 : vector<32x64xf32> to vector<1x32x64xf32>
    tpu.vector_store %arg8[%c0_14, %c0_15, %c0_16], %19 {strides = array<i32>} : memref<1x32x64xf32, #tpu.memory_space<vmem>>, vector<1x32x64xf32>,
    return
  }
  func.func @transform_0(%arg0: i32, %arg1: i32) -> (i32, i32, i32) {
    %c0_i32 = arith.constant 0 : i32
    %c0_i32_0 = arith.constant 0 : i32
    return %arg0, %arg1, %c0_i32 : i32, i32, i32
  }
  func.func @transform_1(%arg0: i32, %arg1: i32) -> (i32, i32) {
    %c0_i32 = arith.constant 0 : i32
    %c0_i32_0 = arith.constant 0 : i32
    %c0_i32_1 = arith.constant 0 : i32
    return %c0_i32, %c0_i32_0 : i32, i32
  }
  func.func @transform_2(%arg0: i32, %arg1: i32) -> (i32, i32) {
    %c0_i32 = arith.constant 0 : i32
    %c0_i32_0 = arith.constant 0 : i32
    %c0_i32_1 = arith.constant 0 : i32
    return %c0_i32, %c0_i32_0 : i32, i32
  }
  func.func @transform_3(%arg0: i32, %arg1: i32) -> (i32, i32) {
    %c0_i32 = arith.constant 0 : i32
    %c0_i32_0 = arith.constant 0 : i32
    %c0_i32_1 = arith.constant 0 : i32
    return %c0_i32, %c0_i32_0 : i32, i32
  }
  func.func @transform_4(%arg0: i32, %arg1: i32) -> (i32, i32) {
    %c0_i32 = arith.constant 0 : i32
    %c0_i32_0 = arith.constant 0 : i32
    %c0_i32_1 = arith.constant 0 : i32
    return %c0_i32, %c0_i32_0 : i32, i32
  }
  func.func @transform_5(%arg0: i32, %arg1: i32) -> (i32, i32, i32) {
    %c0_i32 = arith.constant 0 : i32
    %c0_i32_0 = arith.constant 0 : i32
    return %arg0, %arg1, %c0_i32 : i32, i32, i32
  }
  func.func @transform_6(%arg0: i32, %arg1: i32) -> (i32, i32, i32) {
    %c0_i32 = arith.constant 0 : i32
    %c0_i32_0 = arith.constant 0 : i32
    return %arg0, %c0_i32, %arg1 : i32, i32, i32
  }
}

module attributes {stable_mosaic.version = 11 : i64} {
  func.func @_fused_level_kernel(%arg0: i32, %arg1: i32, %arg2: memref<1x16x64xbf16, #tpu.memory_space<vmem>>, %arg3: memref<64x32xbf16, #tpu.memory_space<vmem>>, %arg4: memref<1x32xf32, #tpu.memory_space<vmem>>, %arg5: memref<32x32xbf16, #tpu.memory_space<vmem>>, %arg6: memref<1x32xf32, #tpu.memory_space<vmem>>, %arg7: memref<1x16x32xbf16, #tpu.memory_space<vmem>>, %arg8: memref<1x32x16xf32, #tpu.memory_space<vmem>>) attributes {dimension_semantics = [#tpu.dimension_semantics<parallel>, #tpu.dimension_semantics<parallel>], iteration_bounds = array<i64: 2, 1>, scalar_prefetch = 0 : i64, scratch_operands = 0 : i64, tpu.core_type = #tpu.core_type<tc>, window_params = [{transform_indices = @transform_0, window_bounds = array<i64: 1, 16, 64>}, {pipeline_mode = #tpu.pipeline_mode<synchronous>, transform_indices = @transform_1, window_bounds = array<i64: 64, 32>}, {pipeline_mode = #tpu.pipeline_mode<synchronous>, transform_indices = @transform_2, window_bounds = array<i64: 1, 32>}, {pipeline_mode = #tpu.pipeline_mode<synchronous>, transform_indices = @transform_3, window_bounds = array<i64: 32, 32>}, {pipeline_mode = #tpu.pipeline_mode<synchronous>, transform_indices = @transform_4, window_bounds = array<i64: 1, 32>}, {transform_indices = @transform_5, window_bounds = array<i64: 1, 16, 32>}, {transform_indices = @transform_6, window_bounds = array<i64: 1, 32, 16>}]} {
    %c0 = arith.constant 0 : index
    %c0_0 = arith.constant 0 : index
    %c0_1 = arith.constant 0 : index
    %0 = vector.load %arg2[%c0, %c0_0, %c0_1] : memref<1x16x64xbf16, #tpu.memory_space<vmem>>, vector<1x16x64xbf16>
    %1 = vector.shape_cast %0 : vector<1x16x64xbf16> to vector<16x64xbf16>
    %c0_2 = arith.constant 0 : index
    %c0_3 = arith.constant 0 : index
    %2 = vector.load %arg3[%c0_2, %c0_3] : memref<64x32xbf16, #tpu.memory_space<vmem>>, vector<64x32xbf16>
    %cst = arith.constant dense<0.000000e+00> : vector<16x32xf32>
    %3 = tpu.matmul %1, %2, %cst {dimension_numbers = #tpu.dot_dimension_numbers<[1], [0], [0], [1], [0, 0, 1, 1], [], []>} : vector<16x64xbf16>, vector<64x32xbf16>, vector<16x32xf32> -> vector<16x32xf32>
    %c0_4 = arith.constant 0 : index
    %c0_5 = arith.constant 0 : index
    %4 = vector.load %arg4[%c0_4, %c0_5] : memref<1x32xf32, #tpu.memory_space<vmem>>, vector<1x32xf32>
    %5 = vector.broadcast %4 : vector<1x32xf32> to vector<16x32xf32>
    %6 = arith.addf %3, %5 : vector<16x32xf32>
    %7 = arith.truncf %6 : vector<16x32xf32> to vector<16x32xbf16>
    %c0_6 = arith.constant 0 : index
    %c0_7 = arith.constant 0 : index
    %c0_8 = arith.constant 0 : index
    %8 = vector.load %arg7[%c0_6, %c0_7, %c0_8] : memref<1x16x32xbf16, #tpu.memory_space<vmem>>, vector<1x16x32xbf16>
    %9 = vector.shape_cast %8 : vector<1x16x32xbf16> to vector<16x32xbf16>
    %10 = vector.shape_cast %7 : vector<16x32xbf16> to vector<1x16x32xbf16>
    tpu.vector_store %arg7[%c0_6, %c0_7, %c0_8], %10 {strides = array<i32>} : memref<1x16x32xbf16, #tpu.memory_space<vmem>>, vector<1x16x32xbf16>,
    %c0_9 = arith.constant 0 : index
    %c0_10 = arith.constant 0 : index
    %11 = vector.load %arg5[%c0_9, %c0_10] : memref<32x32xbf16, #tpu.memory_space<vmem>>, vector<32x32xbf16>
    %cst_11 = arith.constant dense<0.000000e+00> : vector<16x32xf32>
    %12 = tpu.matmul %7, %11, %cst_11 {dimension_numbers = #tpu.dot_dimension_numbers<[1], [0], [0], [1], [0, 0, 1, 1], [], []>} : vector<16x32xbf16>, vector<32x32xbf16>, vector<16x32xf32> -> vector<16x32xf32>
    %c0_12 = arith.constant 0 : index
    %c0_13 = arith.constant 0 : index
    %13 = vector.load %arg6[%c0_12, %c0_13] : memref<1x32xf32, #tpu.memory_space<vmem>>, vector<1x32xf32>
    %14 = vector.broadcast %13 : vector<1x32xf32> to vector<16x32xf32>
    %15 = arith.addf %12, %14 : vector<16x32xf32>
    %16 = tpu.transpose %15, [1, 0] : vector<16x32xf32> -> vector<32x16xf32>
    %c0_14 = arith.constant 0 : index
    %c0_15 = arith.constant 0 : index
    %c0_16 = arith.constant 0 : index
    %17 = vector.load %arg8[%c0_14, %c0_15, %c0_16] : memref<1x32x16xf32, #tpu.memory_space<vmem>>, vector<1x32x16xf32>
    %18 = vector.shape_cast %17 : vector<1x32x16xf32> to vector<32x16xf32>
    %19 = vector.shape_cast %16 : vector<32x16xf32> to vector<1x32x16xf32>
    tpu.vector_store %arg8[%c0_14, %c0_15, %c0_16], %19 {strides = array<i32>} : memref<1x32x16xf32, #tpu.memory_space<vmem>>, vector<1x32x16xf32>,
    return
  }
  func.func @transform_0(%arg0: i32, %arg1: i32) -> (i32, i32, i32) {
    %c0_i32 = arith.constant 0 : i32
    %c0_i32_0 = arith.constant 0 : i32
    return %arg0, %arg1, %c0_i32 : i32, i32, i32
  }
  func.func @transform_1(%arg0: i32, %arg1: i32) -> (i32, i32) {
    %c0_i32 = arith.constant 0 : i32
    %c0_i32_0 = arith.constant 0 : i32
    %c0_i32_1 = arith.constant 0 : i32
    return %c0_i32, %c0_i32_0 : i32, i32
  }
  func.func @transform_2(%arg0: i32, %arg1: i32) -> (i32, i32) {
    %c0_i32 = arith.constant 0 : i32
    %c0_i32_0 = arith.constant 0 : i32
    %c0_i32_1 = arith.constant 0 : i32
    return %c0_i32, %c0_i32_0 : i32, i32
  }
  func.func @transform_3(%arg0: i32, %arg1: i32) -> (i32, i32) {
    %c0_i32 = arith.constant 0 : i32
    %c0_i32_0 = arith.constant 0 : i32
    %c0_i32_1 = arith.constant 0 : i32
    return %c0_i32, %c0_i32_0 : i32, i32
  }
  func.func @transform_4(%arg0: i32, %arg1: i32) -> (i32, i32) {
    %c0_i32 = arith.constant 0 : i32
    %c0_i32_0 = arith.constant 0 : i32
    %c0_i32_1 = arith.constant 0 : i32
    return %c0_i32, %c0_i32_0 : i32, i32
  }
  func.func @transform_5(%arg0: i32, %arg1: i32) -> (i32, i32, i32) {
    %c0_i32 = arith.constant 0 : i32
    %c0_i32_0 = arith.constant 0 : i32
    return %arg0, %arg1, %c0_i32 : i32, i32, i32
  }
  func.func @transform_6(%arg0: i32, %arg1: i32) -> (i32, i32, i32) {
    %c0_i32 = arith.constant 0 : i32
    %c0_i32_0 = arith.constant 0 : i32
    return %arg0, %c0_i32, %arg1 : i32, i32, i32
  }
}

</mosaic_0001>

<bundles_post_ra>
// kernel: image_encoder_forward.3
= control target key start
LH: loop header
LB: loop body
LE: loop exit
PB: predicated region body
PF: predicated region fallthrough
CT: control target
= control target key end

     0   :  { %12 = vsyncpa [#allocation3], 0  ;;  %s1049_s0 = inlined_call_operand.vmem [shape: bf16[2,16,64], index: 0, kind: input, shape index: {}]   ;;  %s1050_s1 = inlined_call_operand.vmem [shape: bf16[64,32], index: 1, kind: input, shape index: {}]   ;;  %s1051_s2 = inlined_call_operand.vmem [shape: f32[1,32], index: 2, kind: input, shape index: {}]   ;;  %s1052_s3 = inlined_call_operand.vmem [shape: bf16[32,32], index: 3, kind: input, shape index: {}]   ;;  %s1053_s4 = inlined_call_operand.vmem [shape: f32[1,32], index: 4, kind: input, shape index: {}]   ;;  %s1054_s5 = inlined_call_operand.hbm [shape: bf16[2,16,32], index: 5, kind: output, shape index: {0}]   ;;  %s1055_s6 = inlined_call_operand.vmem [shape: f32[2,32,16], index: 6, kind: output, shape index: {1}]  }
   0x1   :  { %14 = vsyncpa [#allocation3 + $0x1], 0  ;;  %s899_s21 = smov 0   ;;  %s901_s22 = smov 0  }
   0x2   :  { %s903_s23 = smov 0   ;;  %s905_s24 = smov 0  }
   0x3   :  { %s907_s25 = smov 0   ;;  %s909_s26 = smov 0  }
   0x4 LB: > { %s652_s27 = sadd.s32 4294967295, %s857_s26   ;;  %s653_s28 = sadd.s32 4294967294, %s857_s26   ;;  %s857_s26 = sphi %s909_s26, %s20_s26   ;;  %s853_s25 = sphi %s907_s25, %s1062_s25   ;;  %s849_s24 = sphi %s905_s24, %s1061_s24   ;;  %s845_s23 = sphi %s903_s23, %s1060_s23   ;;  %s841_s22 = sphi %s901_s22, %s1059_s22   ;;  %s837_s21 = sphi %s899_s21, %s1058_s21  }
   0x5   : > { %s32_s29 = sadd.s32 1, %s853_s25  ;;  %s153_s30 = sadd.s32 1, %s845_s23 }
   0x6   : > { %p34_p0 = scmp.ge.s32.totalorder %s32_s29, 2  ;;  %p163_p1 = scmp.ne.s32.totalorder %s845_s23, %s841_s22 }
   0x7   : > { %p164_p2 = scmp.eq.s32.totalorder %s652_s27, 1  ;;  %p169_p3 = scmp.ne.s32.totalorder %s841_s22, %s837_s21 }
   0x8   : > { %s1064_s29 = smov (%p34_p0, %s32_s29), 0  ;;  %p170_p5 = scmp.eq.s32.totalorder %s653_s28, 1 }
   0x9   : > { %p939_p4 = por %p164_p2, %p163_p1  ;;  %s148_s8 = ssub.s32 %s853_s25, %s1064_s29 }
   0xa   : > { %p656_p6 = scmp.ge.s32.totalorder %s857_s26, 1  ;;  %p151_p7 = scmp.eq.s32.totalorder %s148_s8, 0 }
   0xb   : > { %p946_p8 = por %p170_p5, %p169_p3  ;;  %p241_p9 = scmp.lt.s32.totalorder %s857_s26, 3 }
   0xc   : > { %s952_s10 = scalar_select %p151_p7, %s845_s23, %s153_s30  }
   0xd   : > { %p242_p10 = pnand %p656_p6, %p241_p9 }
   0xe   : > { %v772_v0 = vld [vmem:[%s1050_s1] sm:$0xff] (!%p242_p10)   ;;  %v859_v1 = vmov (!%p242_p10), 0.0   ;;  %v773_v2 = vld [vmem:[%s1050_s1 + $0x8] sm:$0xff] (!%p242_p10)   ;;  %vm860_vm0 = vmmov (!%p242_p10), 0   ;;  %p284_p11 = scmp.lt.s32.totalorder (!%p242_p10), %s849_s24, 1  ;;  %v774_v3 = vld [vmem:[%s1050_s1 + $0x10] sm:$0xff] (!%p242_p10)  }
   0xf   : > { %245 = sbr.rel (%p242_p10) target bundleno = 605 (0x25d), region = 40  ;;  %693 = vmatprep.subr.bf16.mxu0 (!%p242_p10), %v859_v1  ;;  %705 = vmatprep.subr.bf16.mxu1 (!%p242_p10), %v859_v1  ;;  %v775_v4 = vld [vmem:[%s1050_s1 + $0x18] sm:$0xff] (!%p242_p10)   ;;  %vm349_vm1 = vcmask (!%p242_p10), 523264   ;;  %v777_v6 = vld [vmem:[%s1052_s3] sm:$0xff] (!%p242_p10)   ;;  %v778_v7 = vld [vmem:[%s1052_s3 + $0x8] sm:$0xff] (!%p242_p10)   ;;  %s270_s14 = sand.u32 (!%p242_p10), 1, %s841_s22  }
  0x10   : > { %694 = vmatpush3.bf16.msra.mxu0 (!%p242_p10), %v772_v0  ;;  %701 = vmatprep.mubr.msk.bf16.mxu0 (!%p242_p10), %vm860_vm0, %v859_v1  ;;  %v662_v8 = vld [vmem:[%s1051_s2] ss:$0 sm:$0xff] (!%p242_p10)  ;;  %vm402_vm2 = vcmask (!%p242_p10), 257024   ;;  %vm428_vm3 = vcmask (!%p242_p10), 261120   ;;  %s684_s30 = sshll.u32 (!%p242_p10), %s849_s24, 7  ;;  %s999_s13 = scalar_lea.sflag (!%p242_p10), [#allocation3], %s270_s14 }
  0x11   : > { %695 = vmatprep.subr.bf16.mxu0 (!%p242_p10), %v859_v1  ;;  %709 = vmatprep.mubr.msk.bf16.mxu1 (!%p242_p10), %vm860_vm0, %v859_v1  ;;  %v671_v18 = vld [vmem:[%s1053_s4] ss:$0 sm:$0xff] (!%p242_p10)  ;;  %s993_s12 = scalar_lea.hbm (!%p242_p10), %s1054_s5, %s684_s30  ;;  %s861_s17 = smov (!%p242_p10), [#allocation2]  }
  0x12   : > { %706 = vmatpush3.bf16.msra.mxu1 (!%p242_p10), %v777_v6 }
  0x13   : > { %707 = vmatprep.subr.bf16.mxu1 (!%p242_p10), %v859_v1 }
  0x14   : > { %696 = vmatpush3.bf16.msra.mxu0 (!%p242_p10), %v773_v2 }
  0x15   : > { %697 = vmatprep.subr.bf16.mxu0 (!%p242_p10), %v859_v1 }
  0x16   : > { %s962_s15 = scalar_select %p284_p11, %s849_s24, 1  ;;  %708 = vmatpush3.bf16.msra.mxu1 %v778_v7 }
  0x17   : > { %s783_s24 = sshll.u32 %s861_s17, 4  ;;  %s784_s24 = int_to_ptr.vmem [resolvable:$false] %s783_s24 }
  0x18   : > { %s680_s18 = sshll.u32 %s962_s15, 3  ;;  %698 = vmatpush3.bf16.msra.mxu0 %v774_v3 }
  0x19   : > { %s291_s27 = scalar_lea.vmem %s1049_s0, %s680_s18  ;;  %699 = vmatprep.subr.bf16.mxu0 %v859_v1  ;;  %s657_s18 = sshll.u32 %s270_s14, 3 }
  0x1a   : > { %v776_v5 = vld [vmem:[%s291_s27] sm:$0xff]   ;;  %s272_s19 = scalar_lea.vmem [#allocation2], %s657_s18  ;;  %s785_s18 = scalar_lea.vmem %s784_s24, 256 }
  0x1b   : > { %s534_s28 = sshll.u32 %s272_s19, 4  ;;  %s995_s28 = int_to_ptr.vmem [resolvable:$true] %s534_s28 }
  0x1c   : > { %700 = vmatpush3.bf16.msra.mxu0 %v775_v4  ;;  %s779_s16 = scalar_lea.vmem %s995_s28, 128  ;;  %p786_p1 = scmp.lt.s32.totalorder %s995_s28, %s784_s24 }
  0x1d   : > { %p780_p12 = scmp.ne.s32.totalorder %s995_s28, %s779_s16  ;;  %p787_p2 = scmp.lt.s32.totalorder %s785_s18, %s779_s16 }
  0x1f   : > { %702 = vmatmul.mubr.msk.bf16.vlgmr.msra.gmra.mrb[0].mxu0 %vm349_vm1, %v776_v5  ;;  %p781_p13 = pnand %p780_p12, %p939_p4  ;;  %p788_p3 = por %p787_p2, %p786_p1 }
  0x21   : > { %p782_p0 = pneg %p781_p13 }
  0x23   : > { %p789_p5 = pnand %p788_p3, %p782_p0 }
  0xf2   : > { %v387_v9 = vpop.f32.mrb[0].mxu0 }
  0xf3   : > { %v388_v10 = vadd.f32 %v662_v8, %v387_v9  ;;  %v703_v11 = vpop.f32.mrb[1].mxu0 }
  0xf4   : > { %v390_v12 = vpop.f32.mrb[2].mxu0 }
  0xf5   : > { %v682_v13 = vpack.c.bf16 %v388_v10, %v388_v10  ;;  %v391_v14 = vadd.f32 %v662_v8, %v390_v12  ;;  %v704_v15 = vpop.f32.mrb[3].mxu0 }
  0xf7   : > { %403 = vst.msk [vmem:[%s272_s19] sm:$0xf] %vm402_vm2, %v682_v13  ;;  %v394_v16 = vpack.c.bf16 %v391_v14, %v388_v10  ;;  %v683_v17 = vpack.c.bf16 %v391_v14, %v391_v14 }
  0xf9   : > { %404 = vst.msk [vmem:[%s272_s19 + $0x4] sm:$0xf] %vm402_vm2, %v683_v17  ;;  %710 = vmatmul.mubr.msk.bf16.vlgmr.msra.gmra.mrb[0].mxu1 %vm428_vm3, %v394_v16 }
 0x1cc   : > { %v466_v19 = vpop.f32.mrb[0].mxu1 }
 0x1cd   : > { %v711_v20 = vpop.f32.mrb[1].mxu1  ;;  %v467_v21 = vadd.f32 %v671_v18, %v466_v19 }
 0x1ce   : > { %v469_v22 = vpop.f32.mrb[2].mxu1 }
 0x1cf   : > { %473 = vxpose.xlu0.b32.start [1/2] (short) (narrow) %v467_v21, 32  ;;  %v712_v23 = vpop.f32.mrb[3].mxu1  ;;  %v470_v24 = vadd.f32 %v671_v18, %v469_v22 }
 0x1d3   : > { %474 = vxpose.xlu0.b32.end [2/2] (short) (narrow) %v470_v24, 32 }
 0x1d4   : > { %792 = shalt.err (!%p789_p5)
}
 0x1d5   : > { %s793_s14 = scalar_lea.hbm %s993_s12, 128  ;;  %s797_s27 = scalar_lea.hbm %s1054_s5, 256 }
 0x1d6   : > { %p794_p6 = scmp.ne.s32.totalorder %s993_s12, %s793_s14  ;;  %p798_p10 = scmp.lt.u32.totalorder %s993_s12, %s1054_s5 }
 0x1d7   : > { %p799_p11 = scmp.lt.u32.totalorder %s797_s27, %s793_s14  ;;  %p801_p13 = scmp.lt.u32.totalorder %s793_s14, %s993_s12 }
 0x1d8   : > { %p795_p7 = pnand %p794_p6, %p939_p4 }
 0x1d9   : > { %p800_p12 = por %p799_p11, %p798_p10 }
 0x1da   : > { %p796_p9 = pneg %p795_p7 }
 0x1db   : > { %p802_p0 = por %p801_p13, %p800_p12 }
 0x1dd   : > { %p803_p1 = pnand %p802_p0, %p796_p9 }
 0x1df   : > { %806 = shalt.err (!%p803_p1)
}
 0x1e0   : > { %s862_s11 = smov 64   ;;  %s863_s16 = smov 4   ;;  %vm505_vm4 = vcmask 130048  }
 0x1e1   : > { %713 = dma.vmem_to_hbm [thread:$0]  (%p939_p4), %s995_s28, 128, %s993_s12, %s999_s13, %s862_s11, %s862_s11, %s863_s16  }
 0x1e2   : > { %s681_s17 = sshll.u32 %s962_s15, 5 }
 0x1e3   : > { %s301_s19 = scalar_lea.vmem %s1055_s6, %s681_s17 }
 0x24f   : > { %v489_v25 = vpop.trf.xlu0 }
 0x250   : > { %506 = vst.msk [vmem:[%s301_s19] sm:$0xff] %vm505_vm4, %v489_v25 }
 0x253   : > { %v490_v26 = vpop.trf.xlu0 }
 0x254   : > { %507 = vst.msk [vmem:[%s301_s19 + $0x8] sm:$0xff] %vm505_vm4, %v490_v26 }
 0x257   : > { %v491_v27 = vpop.trf.xlu0 }
 0x258   : > { %508 = vst.msk [vmem:[%s301_s19 + $0x10] sm:$0xff] %vm505_vm4, %v491_v27 }
 0x25b   : > { %v492_v28 = vpop.trf.xlu0 }
 0x25c   : > { %509 = vst.msk [vmem:[%s301_s19 + $0x18] sm:$0xff] %vm505_vm4, %v492_v28 }
 0x25d PF: > { %p719_p2 = scmp.ge.s32.totalorder %s857_s26, 2  ;;  %s552_s7 = sand.u32 1, %s837_s21  }
 0x25e   : > { %s553_s15 = scalar_lea.sflag [#allocation3], %s552_s7 }
 0x25f   : > { %p716_p4 = pnand %p719_p2, %p946_p8 }
 0x261   : > { %832 = dma.done.wait (!%p716_p4), %s553_s15, 128  }
 0x262   : > { %834 = vsyncadd (!%p716_p4), %s553_s15, 4294967168  ;;  %s20_s26 = sadd.s32 1, %s857_s26   ;;  %s1058_s21 = smov %s841_s22 }
 0x263   : > { %p17_p3 = scmp.ge.s32.totalorder %s20_s26, 4   ;;  %s1059_s22 = smov %s845_s23 }
 0x264   : > { %s1060_s23 = smov %s952_s10  ;;  %s1061_s24 = smov %s853_s25 }
 0x265   : > { %s1062_s25 = smov %s1064_s29  ;;  %19 = sbr.rel (!%p17_p3) target bundleno = 4 (0x4), region = 87 }
 0x26c   :  { %569 = vsyncpa [#allocation3], 1 }
 0x26d   :  { %571 = vsyncpa [#allocation3 + $0x1], 1 }

// kernel: image_encoder_forward.2
= control target key start
LH: loop header
LB: loop body
LE: loop exit
PB: predicated region body
PF: predicated region fallthrough
CT: control target
= control target key end

     0   :  { %s906_s21 = smov 0   ;;  %s908_s22 = smov 0   ;;  %s985_s0 = inlined_call_operand.vmem [shape: bf16[2,64,16], index: 0, kind: input, shape index: {}]   ;;  %s986_s1 = inlined_call_operand.vmem [shape: bf16[16,16], index: 1, kind: input, shape index: {}]   ;;  %s987_s2 = inlined_call_operand.vmem [shape: f32[1,16], index: 2, kind: input, shape index: {}]   ;;  %s988_s3 = inlined_call_operand.vmem [shape: bf16[16,32], index: 3, kind: input, shape index: {}]   ;;  %s989_s4 = inlined_call_operand.vmem [shape: f32[1,32], index: 4, kind: input, shape index: {}]   ;;  %s990_s5 = inlined_call_operand.vmem [shape: bf16[2,64,16], index: 5, kind: output, shape index: {0}]   ;;  %s991_s6 = inlined_call_operand.vmem [shape: f32[2,32,64], index: 6, kind: output, shape index: {1}]  }
   0x1   :  { %s910_s23 = smov 0  }
   0x2 LB: > { %s29_s24 = sadd.s32 1, %s865_s22  ;;  %p742_p0 = scmp.ge.s32.totalorder %s869_s23, 1  ;;  %s869_s23 = sphi %s910_s23, %s17_s23   ;;  %s865_s22 = sphi %s908_s22, %s993_s22   ;;  %s861_s21 = sphi %s906_s21, %s992_s21  }
   0x3   : > { %p31_p1 = scmp.ge.s32.totalorder %s29_s24, 2  ;;  %p238_p2 = scmp.lt.s32.totalorder %s869_s23, 3 }
   0x5   : > { %s995_s24 = smov (%p31_p1, %s29_s24), 0  ;;  %p239_p3 = pnand %p742_p0, %p238_p2 }
   0x6   : > { %v841_v0 = vld [vmem:[%s986_s1] sm:$0xff] (!%p239_p3)   ;;  %p285_p4 = scmp.lt.s32.totalorder (!%p239_p3), %s861_s21, 1  ;;  %vm356_vm0 = vcmask (!%p239_p3), 130048   ;;  %vm466_vm1 = vcmask (!%p239_p3), 125952   ;;  %vm599_vm2 = vcmask (!%p239_p3), 523264  }
   0x7   : > { %242 = sbr.rel (%p239_p3) target bundleno = 596 (0x254), region = 40  ;;  %796 = vmatprep.subr.bf16.mxu0 (!%p239_p3), %v841_v0  ;;  %v846_v5 = vld [vmem:[%s988_s3] sm:$0xff] (!%p239_p3)  }
   0x8   : > { %797 = vmatpush3.bf16.msra.mxu0 (!%p239_p3), %v841_v0  ;;  %806 = vmatprep.subr.bf16.mxu1 (!%p239_p3), %v846_v5  ;;  %v749_v6 = vld [vmem:[%s987_s2] ss:$0 sm:$0xff] (!%p239_p3) }
   0x9   : > { %807 = vmatpush3.bf16.msra.mxu1 (!%p239_p3), %v846_v5  ;;  %v767_v35 = vld [vmem:[%s989_s4] ss:$0 sm:$0xff] (!%p239_p3) }
   0xe   : > { %s997_s21 = smov (!%p285_p4, %s861_s21), 1 }
   0xf   : > { %s927_s27 = sshll.u32 %s997_s21, 5 }
  0x10   : > { %s292_s30 = scalar_lea.vmem %s985_s0, %s927_s27  ;;  %s947_s13 = scalar_lea.vmem %s990_s5, %s927_s27 }
  0x11   : > { %v842_v1 = vld [vmem:[%s292_s30] sm:$0xff]   ;;  %v843_v2 = vld [vmem:[%s292_s30 + $0x8] sm:$0xff]   ;;  %v844_v3 = vld [vmem:[%s292_s30 + $0x10] sm:$0xff]   ;;  %s311_s18 = scalar_lea.vmem %s991_s6, %s927_s27 }
  0x12   : > { %798 = vmatprep.mubr.msk.bf16.mxu0 %vm356_vm0, %v842_v1  ;;  %v845_v4 = vld [vmem:[%s292_s30 + $0x18] sm:$0xff]  }
  0x13   : > { %799 = vmatmul.mubr.msk.bf16.vlgmr.msra.gmra.mrb[0].mxu0 %vm356_vm0, %v843_v2 }
  0x14   : > { %802 = vmatprep.mubr.msk.bf16.mxu0 %vm356_vm0, %v844_v3 }
  0x1b   : > { %803 = vmatmul.mubr.msk.bf16.gmra.mrb[4].mxu0 %vm356_vm0, %v845_v4 }
  0xe6   : > { %v800_v7 = vpop.f32.mrb[0].mxu0 }
  0xe7   : > { %v412_v8 = vadd.f32 %v800_v7, %v749_v6  ;;  %v403_v9 = vpop.f32.mrb[1].mxu0 }
  0xe8   : > { %v404_v10 = vadd.f32 %v749_v6, %v403_v9  ;;  %v801_v11 = vpop.f32.mrb[2].mxu0 }
  0xe9   : > { %v780_v12 = vpack.c.bf16 %v412_v8, %v412_v8  ;;  %v415_v13 = vadd.f32 %v801_v11, %v749_v6  ;;  %v406_v14 = vpop.f32.mrb[3].mxu0 }
  0xea   : > { %v778_v15 = vpack.c.bf16 %v404_v10, %v404_v10  ;;  %v407_v16 = vadd.f32 %v749_v6, %v406_v14 }
  0xeb   : > { %469 = vst.msk [vmem:[%s947_s13 + $0x8] sm:$0xf] %vm466_vm1, %v780_v12  ;;  %v435_v17 = vpack.c.bf16 %v415_v13, %v412_v8  ;;  %v781_v18 = vpack.c.bf16 %v415_v13, %v415_v13 }
  0xec   : > { %467 = vst.msk [vmem:[%s947_s13] sm:$0xf] %vm466_vm1, %v778_v15  ;;  %v779_v19 = vpack.c.bf16 %v407_v16, %v407_v16  ;;  %v434_v20 = vpack.c.bf16 %v407_v16, %v404_v10 }
  0xed   : > { %470 = vst.msk [vmem:[%s947_s13 + $0xc] sm:$0xf] %vm466_vm1, %v781_v18 }
  0xee   : > { %468 = vst.msk [vmem:[%s947_s13 + $0x4] sm:$0xf] %vm466_vm1, %v779_v19  ;;  %808 = vmatprep.mubr.msk.bf16.mxu1 %vm356_vm0, %v434_v20  ;;  %v804_v21 = vpop.f32.mrb[4].mxu0 }
  0xef   : > { %v428_v22 = vadd.f32 %v804_v21, %v749_v6  ;;  %809 = vmatmul.mubr.msk.bf16.vlgmr.msra.gmra.mrb[0].mxu1 %vm356_vm0, %v435_v17  ;;  %v419_v23 = vpop.f32.mrb[5].mxu0 }
  0xf0   : > { %v420_v24 = vadd.f32 %v749_v6, %v419_v23  ;;  %v805_v25 = vpop.f32.mrb[6].mxu0 }
  0xf1   : > { %v784_v26 = vpack.c.bf16 %v428_v22, %v428_v22  ;;  %v431_v27 = vadd.f32 %v805_v25, %v749_v6  ;;  %v422_v28 = vpop.f32.mrb[7].mxu0 }
  0xf2   : > { %v782_v29 = vpack.c.bf16 %v420_v24, %v420_v24  ;;  %v423_v30 = vadd.f32 %v749_v6, %v422_v28 }
  0xf3   : > { %473 = vst.msk [vmem:[%s947_s13 + $0x18] sm:$0xf] %vm466_vm1, %v784_v26  ;;  %v437_v31 = vpack.c.bf16 %v431_v27, %v428_v22  ;;  %v785_v32 = vpack.c.bf16 %v431_v27, %v431_v27 }
  0xf4   : > { %471 = vst.msk [vmem:[%s947_s13 + $0x10] sm:$0xf] %vm466_vm1, %v782_v29  ;;  %v436_v33 = vpack.c.bf16 %v423_v30, %v420_v24  ;;  %v783_v34 = vpack.c.bf16 %v423_v30, %v423_v30 }
  0xf5   : > { %474 = vst.msk [vmem:[%s947_s13 + $0x1c] sm:$0xf] %vm466_vm1, %v785_v32 }
  0xf6   : > { %472 = vst.msk [vmem:[%s947_s13 + $0x14] sm:$0xf] %vm466_vm1, %v783_v34  ;;  %812 = vmatprep.mubr.msk.bf16.mxu1 %vm356_vm0, %v436_v33 }
  0xf7   : > { %813 = vmatmul.mubr.msk.bf16.gmra.mrb[4].mxu1 %vm356_vm0, %v437_v31 }
 0x1c2   : > { %v810_v36 = vpop.f32.mrb[0].mxu1 }
 0x1c3   : > { %v536_v37 = vpop.f32.mrb[1].mxu1  ;;  %v545_v44 = vadd.f32 %v810_v36, %v767_v35 }
 0x1c4   : > { %v811_v38 = vpop.f32.mrb[2].mxu1  ;;  %v537_v39 = vadd.f32 %v767_v35, %v536_v37 }
 0x1c5   : > { %v539_v40 = vpop.f32.mrb[3].mxu1  ;;  %v548_v47 = vadd.f32 %v811_v38, %v767_v35 }
 0x1c6   : > { %567 = vxpose.xlu0.b32.start [1/8] (short) (narrow) %v537_v39, 32  ;;  %v540_v41 = vadd.f32 %v767_v35, %v539_v40 }
 0x1ca   : > { %568 = vxpose.xlu0.b32.cont [2/8] (short) (narrow) %v540_v41, 32  ;;  %v814_v42 = vpop.f32.mrb[4].mxu1 }
 0x1cb   : > { %v552_v43 = vpop.f32.mrb[5].mxu1  ;;  %v561_v50 = vadd.f32 %v814_v42, %v767_v35 }
 0x1cc   : > { %v815_v45 = vpop.f32.mrb[6].mxu1  ;;  %v553_v48 = vadd.f32 %v767_v35, %v552_v43 }
 0x1cd   : > { %v555_v46 = vpop.f32.mrb[7].mxu1  ;;  %v564_v51 = vadd.f32 %v815_v45, %v767_v35 }
 0x1ce   : > { %569 = vxpose.xlu0.b32.cont [3/8] (short) (narrow) %v545_v44, 32  ;;  %v556_v49 = vadd.f32 %v767_v35, %v555_v46 }
 0x1d2   : > { %570 = vxpose.xlu0.b32.cont [4/8] (short) (narrow) %v548_v47, 32 }
 0x1d6   : > { %571 = vxpose.xlu0.b32.cont [5/8] (short) (narrow) %v553_v48, 32 }
 0x1da   : > { %572 = vxpose.xlu0.b32.cont [6/8] (short) (narrow) %v556_v49, 32 }
 0x1de   : > { %573 = vxpose.xlu0.b32.cont [7/8] (short) (narrow) %v561_v50, 32 }
 0x1e2   : > { %574 = vxpose.xlu0.b32.end [8/8] (short) (narrow) %v564_v51, 32 }
 0x246   : > { %v583_v52 = vpop.trf.xlu0 }
 0x247   : > { %600 = vst.msk [vmem:[%s311_s18] sm:$0xff] %vm599_vm2, %v583_v52 }
 0x24a   : > { %v584_v53 = vpop.trf.xlu0 }
 0x24b   : > { %601 = vst.msk [vmem:[%s311_s18 + $0x8] sm:$0xff] %vm599_vm2, %v584_v53 }
 0x24e   : > { %v585_v54 = vpop.trf.xlu0 }
 0x24f   : > { %602 = vst.msk [vmem:[%s311_s18 + $0x10] sm:$0xff] %vm599_vm2, %v585_v54 }
 0x252   : > { %v586_v55 = vpop.trf.xlu0 }
 0x253   : > { %603 = vst.msk [vmem:[%s311_s18 + $0x18] sm:$0xff] %vm599_vm2, %v586_v55 }
 0x254 PF: > { %s17_s23 = sadd.s32 1, %s869_s23   ;;  %s992_s21 = smov %s865_s22 }
 0x255   : > { %p14_p5 = scmp.ge.s32.totalorder %s17_s23, 4   ;;  %s993_s22 = smov %s995_s24 }
 0x257   :  { %16 = sbr.rel (!%p14_p5) target bundleno = 2 (0x2), region = 82 }

</bundles_post_ra>
